<compile_context>
chip_gen: v6e
topology: v6e:2x2x1
jax: 0.10.0
libtpu: 0.0.40
codegen_flags: <defaults>
</compile_context>

<pallas_src>
import functools

import numpy as np
import jax
import jax.numpy as jnp
from jax.experimental import pallas as pl
from jax.experimental.pallas import tpu as pltpu


# ----------------------------------------------------------------------------
# Exact linear operators for AdaptiveAvgPool2d / bilinear (align_corners=False)
# ----------------------------------------------------------------------------
def _pool_matrix(in_size, out_size):
    """PyTorch AdaptiveAvgPool1d as a (out, in) averaging matrix."""
    P = np.zeros((out_size, in_size), np.float32)
    for i in range(out_size):
        start = (i * in_size) // out_size
        end = -((-(i + 1) * in_size) // out_size)  # ceil((i+1)*in/out)
        P[i, start:end] = 1.0 / (end - start)
    return P


def _upsample_matrix(out_size, in_size):
    """PyTorch bilinear (align_corners=False) 1-D interp as (out, in) matrix."""
    U = np.zeros((out_size, in_size), np.float32)
    scale = in_size / out_size
    for o in range(out_size):
        src = (o + 0.5) * scale - 0.5
        src = max(src, 0.0)
        i0 = min(int(np.floor(src)), in_size - 1)
        i1 = min(i0 + 1, in_size - 1)
        l1 = src - i0
        U[o, i0] += 1.0 - l1
        U[o, i1] += l1
    return U


def _round_up(x, m):
    return -(-x // m) * m


def _build_constants(H, W, bin_sizes, oc, hw_align=512):
    """Stacked pooling matrix, padded-flat upsample matrix and bin block mask.

    Spatial padding convention: 1 row top, 2 rows bottom, 1 col left and
    (wp-1-W) cols right with wp = round_up(W+2, 8); the flat slab is then zero
    padded to a multiple of `hw_align` rows.  This keeps every shifted 3x3 tap
    slice in bounds (max flat tap index = (H+2)*wp + 1 < (H+3)*wp <= hwp) and
    keeps every kh*wp tap offset sublane-aligned.
    """
    wp = _round_up(W + 2, 8)
    hp = H + 3
    hwp = _round_up(hp * wp, hw_align)
    b2 = [b * b for b in bin_sizes]
    B2 = sum(b2)
    B2p = _round_up(B2, 8)                       # pad pooled rows to a sublane multiple
    nb = len(bin_sizes)

    P_all = np.zeros((B2p, hwp), np.float32)     # pooled_all = P_all @ xpad_flat
    U_pad = np.zeros((hwp, B2p), np.float32)     # up_pad    = U_pad @ Y (0 on border)
    mask = np.zeros((B2p, nb * oc), np.float32)  # zero cross-bin blocks of Y

    off = 0
    for i, b in enumerate(bin_sizes):
        P2 = np.kron(_pool_matrix(H, b), _pool_matrix(W, b))            # (b^2, HW)
        U2 = np.kron(_upsample_matrix(H, b), _upsample_matrix(W, b))    # (HW, b^2)
        Pe = np.zeros((b * b, hp, wp), np.float32)
        Pe[:, 1:H + 1, 1:W + 1] = P2.reshape(b * b, H, W)
        P_all[off:off + b * b, :hp * wp] = Pe.reshape(b * b, hp * wp)
        Ue = np.zeros((hp, wp, b * b), np.float32)
        Ue[1:H + 1, 1:W + 1, :] = U2.reshape(H, W, b * b)
        U_pad[:hp * wp, off:off + b * b] = Ue.reshape(hp * wp, b * b)
        mask[off:off + b * b, i * oc:(i + 1) * oc] = 1.0
        off += b * b
    return wp, hwp, P_all, U_pad, mask


def _pick_tile(total, preferred, align):
    """Largest multiple of `align` <= preferred dividing `total`.

    Callers pad `total` to a multiple of `align`, so the worst case is `align`
    (never a huge 'full extent' block for large totals)."""
    if total <= preferred:
        return total
    t = (preferred // align) * align
    while t >= align:
        if total % t == 0:
            return t
        t -= align
    return align if total % align == 0 else total


def _vmem_limit_bytes(fallback=64 * 1024 * 1024):
    """~85% of physical VMEM (v5e/v6e: ~108 MiB, v7x: ~54 MiB); safe fallback."""
    try:
        info = pltpu.get_tpu_info()
        cap = getattr(info, "vmem_capacity_bytes", None)
        if cap:
            return int(cap * 0.85)
    except Exception:
        pass
    return fallback


# ----------------------------------------------------------------------------
# Kernel 1: all pyramid stages fused (pool -> 1x1 conv -> BN -> ReLU), x read once
# ----------------------------------------------------------------------------
def _stage_kernel(x_ref, p_ref, w_ref, sc_ref, sh_ref, mask_ref, y_ref, acc_ref):
    # x_ref:(1,T_hw,C)  p_ref:(B2p,T_hw)  w_ref:(C,K)  sc/sh:(1,K)
    # mask:(B2p,K)  y_ref:(1,B2p,K)  acc_ref:(B2p,C) f32
    t = pl.program_id(1)

    @pl.when(t == 0)
    def _init():
        acc_ref[...] = jnp.zeros_like(acc_ref)

    # stacked adaptive-avg-pool for every bin, accumulated over HW tiles
    acc_ref[...] += jnp.dot(p_ref[...], x_ref[0],
                            preferred_element_type=jnp.float32)

    @pl.when(t == pl.num_programs(1) - 1)
    def _finalize():
        y = jnp.dot(acc_ref[...].astype(w_ref.dtype), w_ref[...],
                    preferred_element_type=jnp.float32)
        y = jnp.maximum(y * sc_ref[...] + sh_ref[...], 0.0) * mask_ref[...]
        y_ref[0] = y.astype(y_ref.dtype)


def _run_stages(xpad_flat, p_all, w_cat, sc, sh, mask):
    N, hwp, C = xpad_flat.shape
    B2p = p_all.shape[0]
    K = w_cat.shape[1]
    # hwp is a multiple of 512, so this always yields a 512..2048-row tile.
    t_hw = _pick_tile(hwp, 2048, 512)
    n_hw = hwp // t_hw

    flops = N * (2 * B2p * hwp * C + 2 * B2p * C * K)
    bytes_accessed = (2 * (N * hwp * C + B2p * hwp + C * K)
                      + 4 * (2 * K + B2p * K + N * B2p * K))

    return pl.pallas_call(
        _stage_kernel,
        out_shape=jax.ShapeDtypeStruct((N, B2p, K), jnp.float32),
        grid=(N, n_hw),
        in_specs=[
            pl.BlockSpec((1, t_hw, C), lambda n, t: (n, t, 0)),
            pl.BlockSpec((B2p, t_hw), lambda n, t: (0, t)),
            pl.BlockSpec((C, K), lambda n, t: (0, 0)),
            pl.BlockSpec((1, K), lambda n, t: (0, 0)),
            pl.BlockSpec((1, K), lambda n, t: (0, 0)),
            pl.BlockSpec((B2p, K), lambda n, t: (0, 0)),
        ],
        out_specs=pl.BlockSpec((1, B2p, K), lambda n, t: (n, 0, 0)),
        scratch_shapes=[pltpu.VMEM((B2p, C), jnp.float32)],
        compiler_params=pltpu.CompilerParams(
            dimension_semantics=("parallel", "arbitrary"),
            vmem_limit_bytes=_vmem_limit_bytes()),
        cost_estimate=pl.CostEstimate(flops=flops, transcendentals=0,
                                      bytes_accessed=bytes_accessed),
    )(xpad_flat, p_all, w_cat, sc, sh, mask)


# ----------------------------------------------------------------------------
# Kernel 2: 3x3 bottleneck conv + BN + ReLU, upsample fused in,
#           merged (x|pyramid) channel-tiled reduction, oc-tiled parallel axis
# ----------------------------------------------------------------------------
def _bottleneck_kernel(xpad_ref, y_ref, w_ref, upad_ref, sc_ref, sh_ref,
                       o_ref, acc_ref, up_ref, shf_ref, *, n_cx, H, wp):
    # xpad_ref:(1,hwp,T_c)  y_ref:(1,B2p,T_c)  w_ref:(9,T_c,T_oc)
    # upad_ref:(hwp,B2p)    sc/sh:(1,T_oc)     o_ref:(1,hwr,T_oc)
    # acc_ref:(hwr,T_oc) f32   up_ref:(hwp,T_c) bf16   shf_ref:(2,lw,T_c) bf16
    k = pl.program_id(2)
    hwr = H * wp
    lw = (H + 2) * wp
    cd = xpad_ref.dtype

    @pl.when(k == 0)
    def _init():
        acc_ref[...] = jnp.zeros_like(acc_ref)

    def _accum_taps(load0):
        # All 9 tap operands are sublane-aligned: kh*wp is a multiple of 8
        # (wp padded to 8), and the kw in {1,2} column shifts were materialised
        # once into the aligned shf_ref scratch.
        acc = acc_ref[...]
        for kh in range(3):
            base = kh * wp                       # static, multiple of 8
            for kw in range(3):
                if kw == 0:
                    tap = load0(base)
                else:
                    tap = shf_ref[kw - 1, base:base + hwr, :]
                acc = acc + jnp.dot(tap, w_ref[3 * kh + kw],
                                    preferred_element_type=jnp.float32)
        acc_ref[...] = acc

    # ---- original-feature channels: taps come straight from the padded slab
    @pl.when(k < n_cx)
    def _x_phase():
        shf_ref[0] = xpad_ref[0, 1:1 + lw, :]
        shf_ref[1] = xpad_ref[0, 2:2 + lw, :]
        _accum_taps(lambda s: xpad_ref[0, s:s + hwr, :])

    # ---- pyramid channels: upsample (U_pad @ Y) into an explicit bf16 scratch
    @pl.when(k >= n_cx)
    def _p_phase():
        up_ref[...] = jnp.dot(upad_ref[...], y_ref[0],
                              preferred_element_type=jnp.float32).astype(cd)
        shf_ref[0] = up_ref[1:1 + lw, :]
        shf_ref[1] = up_ref[2:2 + lw, :]
        _accum_taps(lambda s: up_ref[s:s + hwr, :])

    @pl.when(k == pl.num_programs(2) - 1)
    def _finalize():
        o_ref[0] = jnp.maximum(acc_ref[...] * sc_ref[...] + sh_ref[...],
                               0.0).astype(o_ref.dtype)


def _run_bottleneck(xpad_flat, y, wb, u_pad, sc, sh, *, H, wp):
    N, hwp, C = xpad_flat.shape
    oc = wb.shape[-1]
    B2p = u_pad.shape[1]
    hwr = H * wp                      # output rows; junk cols cropped by caller
    lw = (H + 2) * wp
    cd = xpad_flat.dtype

    t_c = _pick_tile(C, 256, 128)     # 256-deep channel tiles (v7x VMEM budget)
    n_cx = C // t_c
    n_k = 2 * n_cx                    # x channels then pyramid channels (kp == C)
    t_oc = _pick_tile(oc, 256, 128)   # oc split -> second parallel axis (v7x 2 TCs)
    n_oc = oc // t_oc

    kernel = functools.partial(_bottleneck_kernel, n_cx=n_cx, H=H, wp=wp)

    flops = N * (18 * hwr * 2 * C * oc + n_oc * 2 * hwp * B2p * C)
    bytes_accessed = (2 * (N * n_oc * hwp * C + N * n_oc * B2p * C
                           + 9 * 2 * C * oc + hwp * B2p + N * hwr * oc)
                      + 4 * 2 * oc)

    return pl.pallas_call(
        kernel,
        out_shape=jax.ShapeDtypeStruct((N, hwr, oc), cd),     # bf16 output
        grid=(N, n_oc, n_k),
        in_specs=[
            pl.BlockSpec((1, hwp, t_c),
                         lambda n, j, k: (n, 0, jnp.minimum(k, n_cx - 1))),
            pl.BlockSpec((1, B2p, t_c),
                         lambda n, j, k: (n, 0, jnp.maximum(k - n_cx, 0))),
            pl.BlockSpec((9, t_c, t_oc), lambda n, j, k: (0, k, j)),   # merged weight
            pl.BlockSpec((hwp, B2p), lambda n, j, k: (0, 0)),
            pl.BlockSpec((1, t_oc), lambda n, j, k: (0, j)),
            pl.BlockSpec((1, t_oc), lambda n, j, k: (0, j)),
        ],
        out_specs=pl.BlockSpec((1, hwr, t_oc), lambda n, j, k: (n, 0, j)),
        scratch_shapes=[
            pltpu.VMEM((hwr, t_oc), jnp.float32),   # resident f32 accumulator
            pltpu.VMEM((hwp, t_c), cd),             # bf16 upsampled pyramid slab
            pltpu.VMEM((2, lw, t_c), cd),           # aligned kw=1,2 shifted slabs
        ],
        compiler_params=pltpu.CompilerParams(
            dimension_semantics=("parallel", "parallel", "arbitrary"),
            vmem_limit_bytes=_vmem_limit_bytes()),
        cost_estimate=pl.CostEstimate(flops=flops, transcendentals=0,
                                      bytes_accessed=bytes_accessed),
    )(xpad_flat, y, wb, u_pad, sc, sh)


# ----------------------------------------------------------------------------
# Parameters (deterministic, PyTorch-default BN stats) and forward pass
# ----------------------------------------------------------------------------
def _bn_scale_shift(oc, eps=1e-5):
    gamma = jnp.ones((1, oc), jnp.float32)
    beta = jnp.zeros((1, oc), jnp.float32)
    running_mean = jnp.zeros((1, oc), jnp.float32)
    running_var = jnp.ones((1, oc), jnp.float32)
    scale = gamma / jnp.sqrt(running_var + eps)
    shift = beta - running_mean * scale
    return scale, shift


def init_params(key, in_channels, bin_sizes):
    oc = in_channels // len(bin_sizes)
    cin_bottleneck = in_channels + oc * len(bin_sizes)
    keys = jax.random.split(key, len(bin_sizes) + 1)
    return {
        # 1x1 conv weights stored as (C_in, OC)  (== torch (OC,C,1,1) transposed)
        "stage_w": [0.1 * jax.random.normal(keys[i], (in_channels, oc), jnp.float32)
                    for i in range(len(bin_sizes))],
        "stage_bn": [_bn_scale_shift(oc) for _ in bin_sizes],
        # 3x3 conv weight stored as (3, 3, C_in, OC)
        "bott_w": 0.1 * jax.random.normal(keys[-1], (3, 3, cin_bottleneck, oc),
                                          jnp.float32),
        "bott_bn": _bn_scale_shift(oc),
    }


def psp_forward(x_nchw, params, bin_sizes, compute_dtype=jnp.bfloat16):
    """Pallas implementation of _PSPModule.forward. Input/output are NCHW."""
    N, C, H, W = x_nchw.shape
    nb = len(bin_sizes)
    assert C % nb == 0
    oc = C // nb
    cd = compute_dtype

    wp, hwp, P_all, U_pad, mask = _build_constants(H, W, bin_sizes, oc)
    hp = H + 3
    P_all = jnp.asarray(P_all).astype(cd)
    U_pad = jnp.asarray(U_pad).astype(cd)
    mask = jnp.asarray(mask)

    # NCHW -> NHWC, pad spatially once ((1,2),(1, wp-1-W)), bf16, flatten, pad rows.
    x = jnp.transpose(x_nchw, (0, 2, 3, 1))
    xpad = jnp.pad(x, ((0, 0), (1, 2), (1, wp - 1 - W), (0, 0))).astype(cd)
    xpad_flat = xpad.reshape(N, hp * wp, C)
    if hwp > hp * wp:
        xpad_flat = jnp.pad(xpad_flat, ((0, 0), (0, hwp - hp * wp), (0, 0)))

    # Stack per-bin 1x1 weights / BN params along the output-channel axis.
    w_cat = jnp.concatenate(params["stage_w"], axis=1).astype(cd)        # (C, nb*oc)
    sc_cat = jnp.concatenate([s for s, _ in params["stage_bn"]], axis=1)
    sh_cat = jnp.concatenate([t for _, t in params["stage_bn"]], axis=1)

    # Kernel 1: pooled + 1x1 + BN + ReLU for every bin (tiny output, no HBM maps).
    y = _run_stages(xpad_flat, P_all, w_cat, sc_cat, sh_cat, mask)

    # Kernel 2: 3x3 conv over [x | upsampled pyramids]; weights merged (9, 2C, oc).
    wb = params["bott_w"].reshape(9, 2 * C, oc).astype(cd)
    bsc, bsh = params["bott_bn"]
    out_slab = _run_bottleneck(xpad_flat, y.astype(cd), wb, U_pad, bsc, bsh,
                               H=H, wp=wp)

    out = out_slab.reshape(N, H, wp, oc)[:, :, :W, :].astype(jnp.float32)
    return jnp.transpose(out, (0, 3, 1, 2))             # NCHW


# ----------------------------------------------------------------------------
# Pure-JAX reference (identical math incl. bf16 casts) for the correctness check
# ----------------------------------------------------------------------------
def psp_reference(x_nchw, params, bin_sizes, compute_dtype=jnp.bfloat16):
    cd = compute_dtype
    N, C, H, W = x_nchw.shape
    nb = len(bin_sizes)
    oc = C // nb
    x = jnp.transpose(x_nchw, (0, 2, 3, 1))
    x_flat = x.reshape(N, H * W, C)
    pyramids = [x]
    for b, w1, (scale, shift) in zip(bin_sizes, params["stage_w"],
                                     params["stage_bn"]):
        P2 = jnp.asarray(np.kron(_pool_matrix(H, b), _pool_matrix(W, b)))
        U2 = jnp.asarray(np.kron(_upsample_matrix(H, b), _upsample_matrix(W, b)))
        pooled = jnp.einsum("ph,nhc->npc", P2.astype(cd), x_flat.astype(cd),
                            preferred_element_type=jnp.float32)
        y = jnp.einsum("npc,co->npo", pooled.astype(cd), w1.astype(cd),
                       preferred_element_type=jnp.float32)
        y = jnp.maximum(y * scale + shift, 0.0)
        up = jnp.einsum("hp,npo->nho", U2.astype(cd), y.astype(cd),
                        preferred_element_type=jnp.float32)
        pyramids.append(up.reshape(N, H, W, oc))
    xcat = jnp.concatenate(pyramids, axis=-1)
    xpad = jnp.pad(xcat, ((0, 0), (1, 1), (1, 1), (0, 0)))
    wb = params["bott_w"]
    acc = jnp.zeros((N, H, W, oc), jnp.float32)
    for kh in range(3):
        for kw in range(3):
            acc = acc + jnp.einsum("nhwc,co->nhwo",
                                   xpad[:, kh:kh + H, kw:kw + W, :].astype(cd),
                                   wb[kh, kw].astype(cd),
                                   preferred_element_type=jnp.float32)
    scale, shift = params["bott_bn"]
    out = jnp.maximum(acc * scale + shift, 0.0)
    # match the kernel's bf16 output rounding
    out = out.astype(jnp.bfloat16).astype(jnp.float32)
    return jnp.transpose(out, (0, 3, 1, 2))


# ----------------------------------------------------------------------------
if __name__ == "__main__":
    key = jax.random.PRNGKey(0)
    kx, kp = jax.random.split(key)

    # small example consistent with the module (in_channels divisible by len(bins))
    N, C, H, W = 2, 16, 16, 16
    bin_sizes = (1, 2, 3, 6)

    x = jax.random.normal(kx, (N, C, H, W), jnp.float32)   # NCHW, like PyTorch
    params = init_params(kp, C, bin_sizes)

    out = psp_forward(x, params, bin_sizes)
    out = jax.block_until_ready(out)

    oc = C // len(bin_sizes)
    assert out.shape == (N, oc, H, W), out.shape
    assert bool(jnp.all(jnp.isfinite(out)))

    ref = psp_reference(x, params, bin_sizes)
    assert bool(jnp.allclose(out, ref, rtol=2e-2, atol=2e-2)), \
        float(jnp.max(jnp.abs(out - ref)))

    print("KERNEL_OK")
</pallas_src>

<mosaic_0001>
module attributes {stable_mosaic.version = 11 : i64} {
  func.func @_stage_kernel(%arg0: i32, %arg1: i32, %arg2: memref<1x512x16xbf16, #tpu.memory_space<vmem>>, %arg3: memref<56x512xbf16, #tpu.memory_space<vmem>>, %arg4: memref<16x16xbf16, #tpu.memory_space<vmem>>, %arg5: memref<1x16xf32, #tpu.memory_space<vmem>>, %arg6: memref<1x16xf32, #tpu.memory_space<vmem>>, %arg7: memref<56x16xf32, #tpu.memory_space<vmem>>, %arg8: memref<1x56x16xf32, #tpu.memory_space<vmem>>, %arg9: memref<56x16xf32, #tpu.memory_space<vmem>>) attributes {dimension_semantics = [#tpu.dimension_semantics<parallel>, #tpu.dimension_semantics<arbitrary>], iteration_bounds = array<i64: 2, 1>, scalar_prefetch = 0 : i64, scratch_operands = 1 : i64, tpu.core_type = #tpu.core_type<tc>, window_params = [{transform_indices = @transform_0, window_bounds = array<i64: 1, 512, 16>}, {transform_indices = @transform_1, window_bounds = array<i64: 56, 512>}, {pipeline_mode = #tpu.pipeline_mode<synchronous>, transform_indices = @transform_2, window_bounds = array<i64: 16, 16>}, {pipeline_mode = #tpu.pipeline_mode<synchronous>, transform_indices = @transform_3, window_bounds = array<i64: 1, 16>}, {pipeline_mode = #tpu.pipeline_mode<synchronous>, transform_indices = @transform_4, window_bounds = array<i64: 1, 16>}, {pipeline_mode = #tpu.pipeline_mode<synchronous>, transform_indices = @transform_5, window_bounds = array<i64: 56, 16>}, {transform_indices = @transform_6, window_bounds = array<i64: 1, 56, 16>}]} {
    %c0_i32 = arith.constant 0 : i32
    %0 = arith.cmpi eq, %arg1, %c0_i32 : i32
    %1 = arith.extui %0 : i1 to i32
    %c0_i32_0 = arith.constant 0 : i32
    %2 = arith.cmpi ne, %1, %c0_i32_0 : i32
    scf.if %2 {
      %cst_11 = arith.constant 0.000000e+00 : f32
      %13 = vector.broadcast %cst_11 : f32 to vector<56x16xf32>
      %c0_12 = arith.constant 0 : index
      %c0_13 = arith.constant 0 : index
      %14 = vector.load %arg9[%c0_12, %c0_13] : memref<56x16xf32, #tpu.memory_space<vmem>>, vector<56x16xf32>
      tpu.vector_store %arg9[%c0_12, %c0_13], %13 {strides = array<i32>} : memref<56x16xf32, #tpu.memory_space<vmem>>, vector<56x16xf32>,
    } else {
    }
    %c0 = arith.constant 0 : index
    %c0_1 = arith.constant 0 : index
    %3 = vector.load %arg9[%c0, %c0_1] : memref<56x16xf32, #tpu.memory_space<vmem>>, vector<56x16xf32>
    %c0_2 = arith.constant 0 : index
    %c0_3 = arith.constant 0 : index
    %4 = vector.load %arg3[%c0_2, %c0_3] : memref<56x512xbf16, #tpu.memory_space<vmem>>, vector<56x512xbf16>
    %c0_4 = arith.constant 0 : index
    %c0_5 = arith.constant 0 : index
    %c0_6 = arith.constant 0 : index
    %5 = vector.load %arg2[%c0_4, %c0_5, %c0_6] : memref<1x512x16xbf16, #tpu.memory_space<vmem>>, vector<1x512x16xbf16>
    %6 = vector.shape_cast %5 : vector<1x512x16xbf16> to vector<512x16xbf16>
    %cst = arith.constant dense<0.000000e+00> : vector<56x16xf32>
    %7 = tpu.matmul %4, %6, %cst {dimension_numbers = #tpu.dot_dimension_numbers<[1], [0], [0], [1], [0, 0, 1, 1], [], []>} : vector<56x512xbf16>, vector<512x16xbf16>, vector<56x16xf32> -> vector<56x16xf32>
    %8 = arith.addf %3, %7 : vector<56x16xf32>
    %c0_7 = arith.constant 0 : index
    %c0_8 = arith.constant 0 : index
    %9 = vector.load %arg9[%c0_7, %c0_8] : memref<56x16xf32, #tpu.memory_space<vmem>>, vector<56x16xf32>
    tpu.vector_store %arg9[%c0_7, %c0_8], %8 {strides = array<i32>} : memref<56x16xf32, #tpu.memory_space<vmem>>, vector<56x16xf32>,
    %c0_i32_9 = arith.constant 0 : i32
    %10 = arith.cmpi eq, %arg1, %c0_i32_9 : i32
    %11 = arith.extui %10 : i1 to i32
    %c0_i32_10 = arith.constant 0 : i32
    %12 = arith.cmpi ne, %11, %c0_i32_10 : i32
    scf.if %12 {
      %c0_11 = arith.constant 0 : index
      %c0_12 = arith.constant 0 : index
      %13 = vector.load %arg9[%c0_11, %c0_12] : memref<56x16xf32, #tpu.memory_space<vmem>>, vector<56x16xf32>
      %14 = arith.truncf %13 : vector<56x16xf32> to vector<56x16xbf16>
      %c0_13 = arith.constant 0 : index
      %c0_14 = arith.constant 0 : index
      %15 = vector.load %arg4[%c0_13, %c0_14] : memref<16x16xbf16, #tpu.memory_space<vmem>>, vector<16x16xbf16>
      %cst_15 = arith.constant dense<0.000000e+00> : vector<56x16xf32>
      %16 = tpu.matmul %14, %15, %cst_15 {dimension_numbers = #tpu.dot_dimension_numbers<[1], [0], [0], [1], [0, 0, 1, 1], [], []>} : vector<56x16xbf16>, vector<16x16xbf16>, vector<56x16xf32> -> vector<56x16xf32>
      %c0_16 = arith.constant 0 : index
      %c0_17 = arith.constant 0 : index
      %17 = vector.load %arg5[%c0_16, %c0_17] : memref<1x16xf32, #tpu.memory_space<vmem>>, vector<1x16xf32>
      %18 = vector.broadcast %17 : vector<1x16xf32> to vector<56x16xf32>
      %19 = arith.mulf %16, %18 : vector<56x16xf32>
      %c0_18 = arith.constant 0 : index
      %c0_19 = arith.constant 0 : index
      %20 = vector.load %arg6[%c0_18, %c0_19] : memref<1x16xf32, #tpu.memory_space<vmem>>, vector<1x16xf32>
      %21 = vector.broadcast %20 : vector<1x16xf32> to vector<56x16xf32>
      %22 = arith.addf %19, %21 : vector<56x16xf32>
      %cst_20 = arith.constant 0.000000e+00 : f32
      %23 = vector.broadcast %cst_20 : f32 to vector<56x16xf32>
      %24 = arith.maximumf %22, %23 : vector<56x16xf32>
      %c0_21 = arith.constant 0 : index
      %c0_22 = arith.constant 0 : index
      %25 = vector.load %arg7[%c0_21, %c0_22] : memref<56x16xf32, #tpu.memory_space<vmem>>, vector<56x16xf32>
      %26 = arith.mulf %24, %25 : vector<56x16xf32>
      %c0_23 = arith.constant 0 : index
      %c0_24 = arith.constant 0 : index
      %c0_25 = arith.constant 0 : index
      %27 = vector.load %arg8[%c0_23, %c0_24, %c0_25] : memref<1x56x16xf32, #tpu.memory_space<vmem>>, vector<1x56x16xf32>
      %28 = vector.shape_cast %27 : vector<1x56x16xf32> to vector<56x16xf32>
      %29 = vector.shape_cast %26 : vector<56x16xf32> to vector<1x56x16xf32>
      tpu.vector_store %arg8[%c0_23, %c0_24, %c0_25], %29 {strides = array<i32>} : memref<1x56x16xf32, #tpu.memory_space<vmem>>, vector<1x56x16xf32>,
    } else {
    }
    return
  }
  func.func @transform_0(%arg0: i32, %arg1: i32) -> (i32, i32, i32) {
    %c0_i32 = arith.constant 0 : i32
    %c0_i32_0 = arith.constant 0 : i32
    return %arg0, %arg1, %c0_i32 : i32, i32, i32
  }
  func.func @transform_1(%arg0: i32, %arg1: i32) -> (i32, i32) {
    %c0_i32 = arith.constant 0 : i32
    %c0_i32_0 = arith.constant 0 : i32
    return %c0_i32, %arg1 : i32, i32
  }
  func.func @transform_2(%arg0: i32, %arg1: i32) -> (i32, i32) {
    %c0_i32 = arith.constant 0 : i32
    %c0_i32_0 = arith.constant 0 : i32
    %c0_i32_1 = arith.constant 0 : i32
    return %c0_i32, %c0_i32_0 : i32, i32
  }
  func.func @transform_3(%arg0: i32, %arg1: i32) -> (i32, i32) {
    %c0_i32 = arith.constant 0 : i32
    %c0_i32_0 = arith.constant 0 : i32
    %c0_i32_1 = arith.constant 0 : i32
    return %c0_i32, %c0_i32_0 : i32, i32
  }
  func.func @transform_4(%arg0: i32, %arg1: i32) -> (i32, i32) {
    %c0_i32 = arith.constant 0 : i32
    %c0_i32_0 = arith.constant 0 : i32
    %c0_i32_1 = arith.constant 0 : i32
    return %c0_i32, %c0_i32_0 : i32, i32
  }
  func.func @transform_5(%arg0: i32, %arg1: i32) -> (i32, i32) {
    %c0_i32 = arith.constant 0 : i32
    %c0_i32_0 = arith.constant 0 : i32
    %c0_i32_1 = arith.constant 0 : i32
    return %c0_i32, %c0_i32_0 : i32, i32
  }
  func.func @transform_6(%arg0: i32, %arg1: i32) -> (i32, i32, i32) {
    %c0_i32 = arith.constant 0 : i32
    %c0_i32_0 = arith.constant 0 : i32
    %c0_i32_1 = arith.constant 0 : i32
    return %arg0, %c0_i32, %c0_i32_0 : i32, i32, i32
  }
}

</mosaic_0001>

<bundles_post_ra>
// kernel: tpu_custom_call.1
= control target key start
LH: loop header
LB: loop body
LE: loop exit
PB: predicated region body
PF: predicated region fallthrough
CT: control target
= control target key end

     0   :  { %s1353_s21 = smov 0   ;;  %s1355_s22 = smov 0   ;;  %s1530_s0 = inlined_call_operand.vmem [shape: bf16[2,512,16], index: 0, kind: input, shape index: {}]   ;;  %s1531_s1 = inlined_call_operand.vmem [shape: bf16[56,512], index: 1, kind: input, shape index: {}]   ;;  %s1532_s2 = inlined_call_operand.vmem [shape: bf16[16,16], index: 2, kind: input, shape index: {}]   ;;  %s1533_s3 = inlined_call_operand.vmem [shape: f32[1,16], index: 3, kind: input, shape index: {}]   ;;  %s1534_s4 = inlined_call_operand.vmem [shape: f32[1,16], index: 4, kind: input, shape index: {}]   ;;  %s1535_s5 = inlined_call_operand.vmem [shape: f32[56,16], index: 5, kind: input, shape index: {}]   ;;  %s1536_s6 = inlined_call_operand.vmem [shape: f32[2,56,16], index: 6, kind: output, shape index: {}]  }
   0x1   :  { %s1357_s23 = smov 0  }
   0x2 LB: > { %s28_s24 = sadd.s32 1, %s1311_s22  ;;  %p1053_p0 = scmp.ge.s32.totalorder %s1315_s23, 1  ;;  %s1315_s23 = sphi %s1357_s23, %s16_s23   ;;  %s1311_s22 = sphi %s1355_s22, %s1538_s22   ;;  %s1307_s21 = sphi %s1353_s21, %s1537_s21  }
   0x3   : > { %p30_p1 = scmp.ge.s32.totalorder %s28_s24, 2  ;;  %p242_p2 = scmp.lt.s32.totalorder %s1315_s23, 3 }
   0x5   : > { %s1540_s24 = smov (%p30_p1, %s28_s24), 0  ;;  %p243_p3 = pnand %p1053_p0, %p242_p2 }
   0x6   : > { %p282_p4 = scmp.lt.s32.totalorder (!%p243_p3), %s1307_s21, 1 }
   0x7   : > { %246 = sbr.rel (%p243_p3) target bundleno = 493 (0x1ed), region = 44 }
   0xc   : > { %v1272_v0 = vld [vmem:[%s1531_s1 + $0x4] ss:$16 sps:$4 sm:$0xff]   ;;  %s1542_s21 = smov (!%p282_p4, %s1307_s21), 1  ;;  %v1275_v1 = vld [vmem:[%s1531_s1 + $0xc] ss:$16 sps:$4 sm:$0xff]   ;;  %vm307_vm0 = vcmask 130048  }
   0xd   : > { %698 = vmatprep.mubr.bf16.mxu0 %v1272_v0  ;;  %s1114_s29 = sshll.u32 %s1542_s21, 8  ;;  %762 = vmatprep.mubr.bf16.mxu1 %v1275_v1  ;;  %v1270_v32 = vld [vmem:[%s1531_s1] ss:$16 sps:$4 sm:$0xff]   ;;  %v1273_v34 = vld [vmem:[%s1531_s1 + $0x8] ss:$16 sps:$4 sm:$0xff]   ;;  %v1317_v50 = vmov 0.0  }
   0xe   : > { %s1383_s8 = scalar_lea.vmem %s1530_s0, %s1114_s29  ;;  %v1276_v36 = vld [vmem:[%s1531_s1 + $0x24] ss:$16 sps:$4 sm:$0xff]   ;;  %v1278_v37 = vld [vmem:[%s1531_s1 + $0x2c] ss:$16 sps:$4 sm:$0xff]   ;;  %v1280_v38 = vld [vmem:[%s1531_s1 + $0x20] ss:$16 sps:$4 sm:$0xff]  }
   0xf   : > { %v1238_v2 = vld [vmem:[%s1383_s8 + $0x78] sm:$0xff]   ;;  %v1242_v6 = vld [vmem:[%s1383_s8 + $0x70] sm:$0xff]   ;;  %v1246_v10 = vld [vmem:[%s1383_s8 + $0x68] sm:$0xff]   ;;  %308 = vst.msk [vmem:[#allocation2] sm:$0xff] %vm307_vm0, %v1317_v50  ;;  %s1212_s19 = smul.u32 56, %s1542_s21 }
  0x10   : > { %v1239_v3 = vld [vmem:[%s1383_s8 + $0xf8] sm:$0xff]   ;;  %1115 = vmatprep.subr.bf16.mxu0 %v1238_v2  ;;  %v1243_v7 = vld [vmem:[%s1383_s8 + $0xf0] sm:$0xff]   ;;  %v1247_v11 = vld [vmem:[%s1383_s8 + $0xe8] sm:$0xff]   ;;  %309 = vst.msk [vmem:[#allocation2 + $0x8] sm:$0xff] %vm307_vm0, %v1317_v50 }
  0x11   : > { %v1240_v4 = vld [vmem:[%s1383_s8 + $0x38] sm:$0xff]   ;;  %1155 = vmatprep.subr.bf16.mxu1 %v1239_v3  ;;  %v1244_v8 = vld [vmem:[%s1383_s8 + $0x30] sm:$0xff]   ;;  %v1248_v12 = vld [vmem:[%s1383_s8 + $0x28] sm:$0xff]   ;;  %310 = vst.msk [vmem:[#allocation2 + $0x10] sm:$0xff] %vm307_vm0, %v1317_v50  ;;  %s1487_s28 = scalar_lea.vmem %s1536_s6, %s1212_s19 }
  0x12   : > { %v1241_v5 = vld [vmem:[%s1383_s8 + $0xb8] sm:$0xff]   ;;  %1116 = vmatpush3.bf16.msra.mxu0 %v1240_v4  ;;  %v1245_v9 = vld [vmem:[%s1383_s8 + $0xb0] sm:$0xff]   ;;  %v1249_v13 = vld [vmem:[%s1383_s8 + $0xa8] sm:$0xff]   ;;  %311 = vst.msk [vmem:[#allocation2 + $0x18] sm:$0xff] %vm307_vm0, %v1317_v50 }
  0x13   : > { %1156 = vmatpush3.bf16.msra.mxu1 %v1241_v5  ;;  %1117 = vmatprep.subr.bf16.mxu0 %v1242_v6  ;;  %v1250_v14 = vld [vmem:[%s1383_s8 + $0x60] sm:$0xff]   ;;  %v1254_v18 = vld [vmem:[%s1383_s8 + $0x58] sm:$0xff]   ;;  %v1258_v22 = vld [vmem:[%s1383_s8 + $0x50] sm:$0xff]   ;;  %312 = vst.msk [vmem:[#allocation2 + $0x20] sm:$0xff] %vm307_vm0, %v1317_v50 }
  0x14   : > { %1157 = vmatprep.subr.bf16.mxu1 %v1243_v7  ;;  %v1251_v15 = vld [vmem:[%s1383_s8 + $0xe0] sm:$0xff]   ;;  %v1255_v19 = vld [vmem:[%s1383_s8 + $0xd8] sm:$0xff]   ;;  %v1259_v23 = vld [vmem:[%s1383_s8 + $0xd0] sm:$0xff]   ;;  %313 = vst.msk [vmem:[#allocation2 + $0x28] sm:$0xff] %vm307_vm0, %v1317_v50 }
  0x15   : > { %v1252_v16 = vld [vmem:[%s1383_s8 + $0x20] sm:$0xff]   ;;  %v1256_v20 = vld [vmem:[%s1383_s8 + $0x18] sm:$0xff]   ;;  %v1260_v24 = vld [vmem:[%s1383_s8 + $0x10] sm:$0xff]   ;;  %314 = vst.msk [vmem:[#allocation2 + $0x30] sm:$0xff] %vm307_vm0, %v1317_v50 }
  0x16   : > { %1118 = vmatpush3.bf16.msra.mxu0 %v1244_v8  ;;  %v1253_v17 = vld [vmem:[%s1383_s8 + $0xa0] sm:$0xff]   ;;  %v1257_v21 = vld [vmem:[%s1383_s8 + $0x98] sm:$0xff]   ;;  %v1261_v25 = vld [vmem:[%s1383_s8 + $0x90] sm:$0xff]  }
  0x17   : > { %1158 = vmatpush3.bf16.msra.mxu1 %v1245_v9  ;;  %1119 = vmatprep.subr.bf16.mxu0 %v1246_v10  ;;  %v1262_v26 = vld [vmem:[%s1383_s8 + $0x48] sm:$0xff]   ;;  %v1266_v30 = vld [vmem:[%s1383_s8 + $0x40] sm:$0xff]  }
  0x18   : > { %1159 = vmatprep.subr.bf16.mxu1 %v1247_v11  ;;  %v1263_v27 = vld [vmem:[%s1383_s8 + $0xc8] sm:$0xff]   ;;  %v1267_v31 = vld [vmem:[%s1383_s8 + $0xc0] sm:$0xff]  }
  0x19   : > { %v1264_v28 = vld [vmem:[%s1383_s8 + $0x8] sm:$0xff]   ;;  %v1268_v33 = vld [vmem:[%s1383_s8] sm:$0xff]  }
  0x1a   : > { %1120 = vmatpush3.bf16.msra.mxu0 %v1248_v12  ;;  %v1265_v29 = vld [vmem:[%s1383_s8 + $0x88] sm:$0xff]   ;;  %v1269_v35 = vld [vmem:[%s1383_s8 + $0x80] sm:$0xff]  }
  0x1b   : > { %1160 = vmatpush3.bf16.msra.mxu1 %v1249_v13  ;;  %1121 = vmatprep.subr.bf16.mxu0 %v1250_v14  ;;  %v1281_v39 = vld [vmem:[%s1531_s1 + $0x28] ss:$16 sps:$4 sm:$0xff]   ;;  %v1282_v40 = vld [vmem:[%s1531_s1 + $0x44] ss:$16 sps:$4 sm:$0xff]   ;;  %v1284_v41 = vld [vmem:[%s1531_s1 + $0x4c] ss:$16 sps:$4 sm:$0xff]  }
  0x1c   : > { %1161 = vmatprep.subr.bf16.mxu1 %v1251_v15  ;;  %v334_v42 = vld [vmem:[%s1531_s1 + $0x60] sm:$0xff]  ;;  %v335_v43 = vld [vmem:[%s1531_s1 + $0x68] sm:$0xff]  ;;  %v317_v13 = vld [vmem:[#allocation2 + $0x10] sm:$0xff] }
  0x1d   : > { %v1286_v44 = vld [vmem:[%s1531_s1 + $0x40] ss:$16 sps:$4 sm:$0xff]   ;;  %v1287_v45 = vld [vmem:[%s1531_s1 + $0x48] ss:$16 sps:$4 sm:$0xff]   ;;  %v1070_v46 = vcombine.high %v334_v42, %v334_v42  ;;  %v1072_v47 = vcombine.high %v335_v43, %v335_v43  ;;  %v1069_v48 = vcombine.low %v334_v42, %v334_v42  ;;  %v1071_v49 = vcombine.low %v335_v43, %v335_v43 }
  0x1e   : > { %1122 = vmatpush3.bf16.msra.mxu0 %v1252_v16  ;;  %v1292_v51 = vld [vmem:[%s1532_s2] sm:$0xff]   ;;  %v316_v4 = vld [vmem:[#allocation2 + $0x8] sm:$0xff] }
  0x1f   : > { %1162 = vmatpush3.bf16.msra.mxu1 %v1253_v17  ;;  %1123 = vmatprep.subr.bf16.mxu0 %v1254_v18  ;;  %v315_v59 = vld [vmem:[#allocation2] sm:$0xff]  ;;  %v320_v43 = vld [vmem:[#allocation2 + $0x28] sm:$0xff] }
  0x20   : > { %1163 = vmatprep.subr.bf16.mxu1 %v1255_v19 }
  0x22   : > { %1124 = vmatpush3.bf16.msra.mxu0 %v1256_v20 }
  0x23   : > { %1164 = vmatpush3.bf16.msra.mxu1 %v1257_v21  ;;  %1125 = vmatprep.subr.bf16.mxu0 %v1258_v22  ;;  %v318_v22 = vld [vmem:[#allocation2 + $0x18] sm:$0xff] }
  0x24   : > { %1165 = vmatprep.subr.bf16.mxu1 %v1259_v23 }
  0x26   : > { %1126 = vmatpush3.bf16.msra.mxu0 %v1260_v24 }
  0x27   : > { %1166 = vmatpush3.bf16.msra.mxu1 %v1261_v25  ;;  %1127 = vmatprep.subr.bf16.mxu0 %v1262_v26 }
  0x28   : > { %1167 = vmatprep.subr.bf16.mxu1 %v1263_v27 }
  0x2a   : > { %1128 = vmatpush3.bf16.msra.mxu0 %v1264_v28 }
  0x2b   : > { %1168 = vmatpush3.bf16.msra.mxu1 %v1265_v29  ;;  %1129 = vmatprep.subr.bf16.mxu0 %v1266_v30 }
  0x2c   : > { %1169 = vmatprep.subr.bf16.mxu1 %v1267_v31  ;;  %v319_v31 = vld [vmem:[#allocation2 + $0x20] sm:$0xff] }
  0x2e   : > { %1130 = vmatpush3.bf16.msra.mxu0 %v1268_v33 }
  0x2f   : > { %1170 = vmatpush3.bf16.msra.mxu1 %v1269_v35  ;;  %1200 = vmatprep.subr.bf16.mxu0 %v1292_v51 }
  0x30   : > { %1210 = vmatprep.subr.bf16.mxu1 %v1292_v51 }
  0x31   : > { %699 = vmatmul.mubr.bf16.vlgmr.msra.gmra.mxu0 %v1270_v32 }
  0x32   : > { %763 = vmatmul.mubr.bf16.vlgmr.msra.gmra.mxu1 %v1273_v34  ;;  %706 = vmatprep.mubr.bf16.mxu0 %v1276_v36 }
  0x33   : > { %770 = vmatprep.mubr.bf16.mxu1 %v1278_v37  ;;  %1201 = vmatpush3.bf16.msra.mxu0 %v1292_v51 }
  0x34   : > { %1211 = vmatpush3.bf16.msra.mxu1 %v1292_v51 }
  0x39   : > { %707 = vmatmul.mubr.bf16.gmra.mxu0 %v1280_v38 }
  0x3a   : > { %771 = vmatmul.mubr.bf16.gmra.mxu1 %v1281_v39  ;;  %714 = vmatprep.mubr.bf16.mxu0 %v1282_v40 }
  0x3b   : > { %778 = vmatprep.mubr.bf16.mxu1 %v1284_v41 }
  0x41   : > { %715 = vmatmul.mubr.bf16.gmra.mxu0 %v1286_v44 }
  0x42   : > { %779 = vmatmul.mubr.bf16.gmra.mxu1 %v1287_v45  ;;  %722 = vmatprep.mubr.bf16.mxu0 %v1070_v46 }
  0x43   : > { %786 = vmatprep.mubr.bf16.mxu1 %v1072_v47 }
  0x49   : > { %723 = vmatmul.mubr.bf16.gmra.mxu0 %v1069_v48 }
  0x4a   : > { %787 = vmatmul.mubr.bf16.gmra.mxu1 %v1071_v49 }
  0xf1   : > { %v1131_v52 = vpop.f32.mrf.mxu0 }
  0xf2   : > { %v1171_v53 = vpop.f32.mrf.mxu1 }
  0xf3   : > { %v1132_v54 = vpop.f32.mrf.mxu0 }
  0xf4   : > { %v1133_v55 = vadd.f32 %v1132_v54, %v1131_v52  ;;  %v1172_v56 = vpop.f32.mrf.mxu1  ;;  %v321_v52 = vld [vmem:[#allocation2 + $0x30] sm:$0xff] }
  0xf5   : > { %v1173_v57 = vadd.f32 %v1172_v56, %v1171_v53  ;;  %v1134_v58 = vpop.f32.mrf.mxu0 }
  0xf6   : > { %v1174_v60 = vpop.f32.mrf.mxu1 }
  0xf7   : > { %v765_v61 = vadd.f32 %v1173_v57, %v1133_v55  ;;  %v1135_v62 = vpop.f32.mrf.mxu0 }
  0xf8   : > { %v1136_v63 = vadd.f32 %v1135_v62, %v1134_v58  ;;  %v1175_v0 = vpop.f32.mrf.mxu1 }
  0xf9   : > { %v794_v1 = vadd.f32 %v765_v61, %v315_v59  ;;  %v1176_v2 = vadd.f32 %v1175_v0, %v1174_v60  ;;  %v1137_v3 = vpop.f32.mrf.mxu0 }
  0xfa   : > { %v1177_v5 = vpop.f32.mrf.mxu1 }
  0xfb   : > { %802 = vst.msk [vmem:[#allocation2] sm:$0xff] %vm307_vm0, %v794_v1  ;;  %v768_v6 = vadd.f32 %v1176_v2, %v1136_v63  ;;  %v1138_v7 = vpop.f32.mrf.mxu0  ;;  %v1110_v2 = vld [vmem:[%s1533_s3] ss:$0 sm:$0xff] }
  0xfc   : > { %v1139_v8 = vadd.f32 %v1138_v7, %v1137_v3  ;;  %v1178_v9 = vpop.f32.mrf.mxu1 }
  0xfd   : > { %v795_v10 = vadd.f32 %v768_v6, %v316_v4  ;;  %v1179_v11 = vadd.f32 %v1178_v9, %v1177_v5  ;;  %v1140_v12 = vpop.f32.mrf.mxu0  ;;  %v1111_v4 = vld [vmem:[%s1534_s4] ss:$0 sm:$0xff]  ;;  %v944_v9 = vld [vmem:[%s1535_s5 + $0x10] sm:$0xff] }
  0xfe   : > { %v1180_v14 = vpop.f32.mrf.mxu1 }
  0xff   : > { %803 = vst.msk [vmem:[#allocation2 + $0x8] sm:$0xff] %vm307_vm0, %v795_v10  ;;  %v773_v15 = vadd.f32 %v1179_v11, %v1139_v8  ;;  %v1141_v16 = vpop.f32.mrf.mxu0 }
 0x100   : > { %v1142_v17 = vadd.f32 %v1141_v16, %v1140_v12  ;;  %v1181_v18 = vpop.f32.mrf.mxu1 }
 0x101   : > { %v796_v19 = vadd.f32 %v773_v15, %v317_v13  ;;  %v1182_v20 = vadd.f32 %v1181_v18, %v1180_v14  ;;  %v1143_v21 = vpop.f32.mrf.mxu0  ;;  %v942_v14 = vld [vmem:[%s1535_s5] sm:$0xff] }
 0x102   : > { %v1183_v23 = vpop.f32.mrf.mxu1  ;;  %v812_v33 = vld [vmem:[#allocation2] sm:$0xff] }
 0x103   : > { %804 = vst.msk [vmem:[#allocation2 + $0x10] sm:$0xff] %vm307_vm0, %v796_v19  ;;  %v776_v24 = vadd.f32 %v1182_v20, %v1142_v17  ;;  %v1144_v25 = vpop.f32.mrf.mxu0  ;;  %v945_v20 = vld [vmem:[%s1535_s5 + $0x18] sm:$0xff] }
 0x104   : > { %v1145_v26 = vadd.f32 %v1144_v25, %v1143_v21  ;;  %v1184_v27 = vpop.f32.mrf.mxu1 }
 0x105   : > { %v797_v28 = vadd.f32 %v776_v24, %v318_v22  ;;  %v1185_v29 = vadd.f32 %v1184_v27, %v1183_v23  ;;  %v1146_v30 = vpop.f32.mrf.mxu0  ;;  %v943_v24 = vld [vmem:[%s1535_s5 + $0x8] sm:$0xff] }
 0x106   : > { %v1186_v32 = vpop.f32.mrf.mxu1  ;;  %v813_v34 = vld [vmem:[#allocation2 + $0x8] sm:$0xff] }
 0x107   : > { %805 = vst.msk [vmem:[#allocation2 + $0x18] sm:$0xff] %vm307_vm0, %v797_v28  ;;  %v781_v35 = vadd.f32 %v1185_v29, %v1145_v26  ;;  %v1147_v36 = vpop.f32.mrf.mxu0  ;;  %v819_v37 = vpack.c.bf16 %v813_v34, %v812_v33  ;;  %v948_v33 = vld [vmem:[%s1535_s5 + $0x30] sm:$0xff] }
 0x108   : > { %v1148_v38 = vadd.f32 %v1147_v36, %v1146_v30  ;;  %v1187_v39 = vpop.f32.mrf.mxu1 }
 0x109   : > { %v798_v40 = vadd.f32 %v781_v35, %v319_v31  ;;  %v1188_v41 = vadd.f32 %v1187_v39, %v1186_v32  ;;  %1202 = vmatprep.mubr.msk.bf16.mxu0 %vm307_vm0, %v819_v37  ;;  %v1149_v42 = vpop.f32.mrf.mxu0  ;;  %v946_v37 = vld [vmem:[%s1535_s5 + $0x20] sm:$0xff] }
 0x10a   : > { %v1189_v44 = vpop.f32.mrf.mxu1  ;;  %v814_v54 = vld [vmem:[#allocation2 + $0x10] sm:$0xff] }
 0x10b   : > { %806 = vst.msk [vmem:[#allocation2 + $0x20] sm:$0xff] %vm307_vm0, %v798_v40  ;;  %v784_v45 = vadd.f32 %v1188_v41, %v1148_v38  ;;  %v1150_v46 = vpop.f32.mrf.mxu0 }
 0x10c   : > { %v1151_v47 = vadd.f32 %v1150_v46, %v1149_v42  ;;  %v1190_v48 = vpop.f32.mrf.mxu1 }
 0x10d   : > { %v799_v49 = vadd.f32 %v784_v45, %v320_v43  ;;  %v1191_v50 = vadd.f32 %v1190_v48, %v1189_v44  ;;  %v1152_v51 = vpop.f32.mrf.mxu0  ;;  %v947_v44 = vld [vmem:[%s1535_s5 + $0x28] sm:$0xff] }
 0x10e   : > { %v1192_v53 = vpop.f32.mrf.mxu1  ;;  %v815_v55 = vld [vmem:[#allocation2 + $0x18] sm:$0xff] }
 0x10f   : > { %807 = vst.msk [vmem:[#allocation2 + $0x28] sm:$0xff] %vm307_vm0, %v799_v49  ;;  %v789_v56 = vadd.f32 %v1191_v50, %v1151_v47  ;;  %v1153_v57 = vpop.f32.mrf.mxu0  ;;  %v820_v58 = vpack.c.bf16 %v815_v55, %v814_v54 }
 0x110   : > { %v1193_v59 = vpop.f32.mrf.mxu1 }
 0x111   : > { %v800_v60 = vadd.f32 %v789_v56, %v321_v52  ;;  %1203 = vmatmul.mubr.msk.bf16.vlgmr.msra.gmra.mxu0 %vm307_vm0, %v820_v58 }
 0x112   : > { %v816_v61 = vld [vmem:[#allocation2 + $0x20] sm:$0xff] }
 0x113   : > { %808 = vst.msk [vmem:[#allocation2 + $0x30] sm:$0xff] %vm307_vm0, %v800_v60 }
 0x116   : > { %v817_v62 = vld [vmem:[#allocation2 + $0x28] sm:$0xff] }
 0x117   : > { %v821_v63 = vpack.c.bf16 %v817_v62, %v816_v61 }
 0x119   : > { %1206 = vmatprep.mubr.msk.bf16.mxu1 %vm307_vm0, %v821_v63 }
 0x11a   : > { %v818_v0 = vld [vmem:[#allocation2 + $0x30] sm:$0xff] }
 0x11b   : > { %v822_v1 = vpack.c.bf16 %v818_v0, %v818_v0 }
 0x11d   : > { %1207 = vmatmul.mubr.msk.bf16.vlgmr.msra.gmra.mxu1 %vm307_vm0, %v822_v1 }
 0x1d1   : > { %v1204_v3 = vpop.f32.mrf.mxu0 }
 0x1d2   : > { %v916_v5 = vmul.f32 %v1204_v3, %v1110_v2 }
 0x1d3   : > { %v877_v6 = vpop.f32.mrf.mxu0 }
 0x1d4   : > { %v930_v7 = vadd.f32 %v1111_v4, %v916_v5  ;;  %v914_v8 = vmul.f32 %v1110_v2, %v877_v6 }
 0x1d5   : > { %v1205_v10 = vpop.f32.mrf.mxu0 }
 0x1d6   : > { %v937_v11 = vmax.f32 %v930_v7, 0.0  ;;  %v928_v12 = vadd.f32 %v1111_v4, %v914_v8  ;;  %v917_v13 = vmul.f32 %v1205_v10, %v1110_v2 }
 0x1d7   : > { %v880_v15 = vpop.f32.mrf.mxu0 }
 0x1d8   : > { %v951_v16 = vmul.f32 %v944_v9, %v937_v11  ;;  %v935_v17 = vmax.f32 %v928_v12, 0.0  ;;  %v931_v18 = vadd.f32 %v1111_v4, %v917_v13  ;;  %v915_v19 = vmul.f32 %v1110_v2, %v880_v15 }
 0x1da   : > { %958 = vst.msk [vmem:[%s1487_s28 + $0x10] sm:$0xff] %vm307_vm0, %v951_v16  ;;  %v949_v21 = vmul.f32 %v942_v14, %v935_v17  ;;  %v938_v22 = vmax.f32 %v931_v18, 0.0  ;;  %v929_v23 = vadd.f32 %v1111_v4, %v915_v19 }
 0x1dc   : > { %956 = vst.msk [vmem:[%s1487_s28] sm:$0xff] %vm307_vm0, %v949_v21  ;;  %v952_v25 = vmul.f32 %v945_v20, %v938_v22  ;;  %v936_v26 = vmax.f32 %v929_v23, 0.0 }
 0x1dd   : > { %v1208_v27 = vpop.f32.mrf.mxu1 }
 0x1de   : > { %959 = vst.msk [vmem:[%s1487_s28 + $0x18] sm:$0xff] %vm307_vm0, %v952_v25  ;;  %v950_v28 = vmul.f32 %v943_v24, %v936_v26  ;;  %v920_v29 = vmul.f32 %v1208_v27, %v1110_v2 }
 0x1df   : > { %v893_v30 = vpop.f32.mrf.mxu1 }
 0x1e0   : > { %957 = vst.msk [vmem:[%s1487_s28 + $0x8] sm:$0xff] %vm307_vm0, %v950_v28  ;;  %v934_v31 = vadd.f32 %v1111_v4, %v920_v29  ;;  %v918_v32 = vmul.f32 %v1110_v2, %v893_v30 }
 0x1e1   : > { %v1209_v34 = vpop.f32.mrf.mxu1 }
 0x1e2   : > { %v941_v35 = vmax.f32 %v934_v31, 0.0  ;;  %v932_v36 = vadd.f32 %v1111_v4, %v918_v32 }
 0x1e3   : > { %v896_v38 = vpop.f32.mrf.mxu1 }
 0x1e4   : > { %v955_v39 = vmul.f32 %v948_v33, %v941_v35  ;;  %v939_v40 = vmax.f32 %v932_v36, 0.0  ;;  %v919_v41 = vmul.f32 %v1110_v2, %v896_v38 }
 0x1e6   : > { %962 = vst.msk [vmem:[%s1487_s28 + $0x30] sm:$0xff] %vm307_vm0, %v955_v39  ;;  %v953_v42 = vmul.f32 %v946_v37, %v939_v40  ;;  %v933_v43 = vadd.f32 %v1111_v4, %v919_v41 }
 0x1e8   : > { %960 = vst.msk [vmem:[%s1487_s28 + $0x20] sm:$0xff] %vm307_vm0, %v953_v42  ;;  %v940_v45 = vmax.f32 %v933_v43, 0.0 }
 0x1ea   : > { %v954_v46 = vmul.f32 %v947_v44, %v940_v45 }
 0x1ec   : > { %961 = vst.msk [vmem:[%s1487_s28 + $0x28] sm:$0xff] %vm307_vm0, %v954_v46 }
 0x1ed PF: > { %s16_s23 = sadd.s32 1, %s1315_s23   ;;  %s1537_s21 = smov %s1311_s22 }
 0x1ee   : > { %p13_p5 = scmp.ge.s32.totalorder %s16_s23, 4   ;;  %s1538_s22 = smov %s1540_s24 }
 0x1f0   :  { %15 = sbr.rel (!%p13_p5) target bundleno = 2 (0x2), region = 85 }

</bundles_post_ra>
